<compile_context>
chip_gen: v7x
topology: tpu7x:2x2x1
jax: 0.10.0
libtpu: 0.0.40
codegen_flags: <defaults>
</compile_context>

<pallas_src>
import functools

import jax
import jax.numpy as jnp
from jax.experimental import pallas as pl
from jax.experimental.pallas import tpu as pltpu


def _round_up(x, m):
    return (x + m - 1) // m * m


# --------------------------------------------------------------------------
# Pallas matmul kernel (MXU, bf16 inputs, f32 accumulation in output block)
# --------------------------------------------------------------------------

def _matmul_kernel(a_ref, b_ref, o_ref):
    @pl.when(pl.program_id(2) == 0)
    def _():
        o_ref[...] = jnp.zeros_like(o_ref)
    o_ref[...] += jnp.dot(a_ref[...], b_ref[...],
                          preferred_element_type=jnp.float32)


def pallas_matmul(a, b):
    """a: [M, K], b: [K, N] -> padded [Mp, Np] f32 (caller slices)."""
    M, K = a.shape
    K2, N = b.shape
    assert K == K2
    tm = min(256, _round_up(M, 8))
    tn = min(256, _round_up(N, 128))
    tk = min(512, _round_up(K, 128))
    Mp, Kp, Np = _round_up(M, tm), _round_up(K, tk), _round_up(N, tn)

    a_p = a.astype(jnp.bfloat16)
    if (Mp, Kp) != (M, K):
        a_p = jnp.pad(a_p, ((0, Mp - M), (0, Kp - K)))
    b_p = b.astype(jnp.bfloat16)
    if (Kp, Np) != (K, N):
        b_p = jnp.pad(b_p, ((0, Kp - K), (0, Np - N)))

    out = pl.pallas_call(
        _matmul_kernel,
        out_shape=jax.ShapeDtypeStruct((Mp, Np), jnp.float32),
        grid_spec=pltpu.PrefetchScalarGridSpec(
            num_scalar_prefetch=0,
            grid=(Mp // tm, Np // tn, Kp // tk),
            in_specs=[pl.BlockSpec((tm, tk), lambda i, j, k: (i, k)),
                      pl.BlockSpec((tk, tn), lambda i, j, k: (k, j))],
            out_specs=pl.BlockSpec((tm, tn), lambda i, j, k: (i, j))),
        compiler_params=pltpu.CompilerParams(
            dimension_semantics=("parallel", "parallel", "arbitrary"),
            vmem_limit_bytes=48 * 1024 * 1024),
    )(a_p, b_p)
    return out  # (Mp, Np) f32, zero rows/cols in the padding


# --------------------------------------------------------------------------
# Pallas BatchNorm kernels (two-pass: tiled stats reduction + tiled apply)
# --------------------------------------------------------------------------

def _bn_stats_kernel(x_ref, sum_ref, sq_ref):
    @pl.when(pl.program_id(0) == 0)
    def _():
        sum_ref[...] = jnp.zeros_like(sum_ref)
        sq_ref[...] = jnp.zeros_like(sq_ref)
    x = x_ref[...]
    sum_ref[...] += jnp.sum(x, axis=0, keepdims=True)
    sq_ref[...] += jnp.sum(x * x, axis=0, keepdims=True)


def _bn_apply_kernel(x_ref, scale_ref, shift_ref, o_ref, *, relu):
    y = x_ref[...] * scale_ref[...] + shift_ref[...]
    if relu:
        y = jnp.maximum(y, 0.0)
    o_ref[...] = y


def _bn_apply_res_kernel(x_ref, res_ref, scale_ref, shift_ref, o_ref, *, relu):
    y = x_ref[...] * scale_ref[...] + shift_ref[...] + res_ref[...]
    if relu:
        y = jnp.maximum(y, 0.0)
    o_ref[...] = y


def _pick_bn_tile(Mp):
    if Mp <= 512:
        return Mp
    for t in (512, 256, 128, 64, 32, 16, 8):
        if Mp % t == 0:
            return t
    return Mp


def bn_act(x_pad, m_true, gamma, beta, residual=None, relu=True, eps=1e-5):
    """x_pad: [Mp, Cp] f32 conv output (padded rows/cols are exact zeros).
    m_true: logical row count for the batch statistics."""
    Mp, Cp = x_pad.shape
    C = gamma.shape[0]
    tm = _pick_bn_tile(Mp)
    grid = (Mp // tm,)

    # Pass 1: per-channel sum / sum-of-squares (global over all M tiles).
    s, sq = pl.pallas_call(
        _bn_stats_kernel,
        out_shape=(jax.ShapeDtypeStruct((1, Cp), jnp.float32),
                   jax.ShapeDtypeStruct((1, Cp), jnp.float32)),
        grid_spec=pltpu.PrefetchScalarGridSpec(
            num_scalar_prefetch=0,
            grid=grid,
            in_specs=[pl.BlockSpec((tm, Cp), lambda i: (i, 0))],
            out_specs=(pl.BlockSpec((1, Cp), lambda i: (0, 0)),
                       pl.BlockSpec((1, Cp), lambda i: (0, 0)))),
        compiler_params=pltpu.CompilerParams(
            dimension_semantics=("arbitrary",)),
    )(x_pad)

    # Tiny (1, Cp) glue: fold stats into per-channel scale/shift.
    inv_m = 1.0 / float(m_true)
    mean = s * inv_m
    var = jnp.maximum(sq * inv_m - mean * mean, 0.0)   # biased variance
    g2 = jnp.pad(gamma.reshape(1, C), ((0, 0), (0, Cp - C)))
    b2 = jnp.pad(beta.reshape(1, C), ((0, 0), (0, Cp - C)))
    scale = g2 * jax.lax.rsqrt(var + eps)
    shift = b2 - mean * scale

    # Pass 2: normalize (+ residual) (+ ReLU), tiled over M.
    if residual is None:
        kernel = functools.partial(_bn_apply_kernel, relu=relu)
        args = (x_pad, scale, shift)
        in_specs = [pl.BlockSpec((tm, Cp), lambda i: (i, 0)),
                    pl.BlockSpec((1, Cp), lambda i: (0, 0)),
                    pl.BlockSpec((1, Cp), lambda i: (0, 0))]
    else:
        assert residual.shape == (Mp, Cp)
        kernel = functools.partial(_bn_apply_res_kernel, relu=relu)
        args = (x_pad, residual, scale, shift)
        in_specs = [pl.BlockSpec((tm, Cp), lambda i: (i, 0)),
                    pl.BlockSpec((tm, Cp), lambda i: (i, 0)),
                    pl.BlockSpec((1, Cp), lambda i: (0, 0)),
                    pl.BlockSpec((1, Cp), lambda i: (0, 0))]

    out = pl.pallas_call(
        kernel,
        out_shape=jax.ShapeDtypeStruct((Mp, Cp), jnp.float32),
        grid_spec=pltpu.PrefetchScalarGridSpec(
            num_scalar_prefetch=0,
            grid=grid,
            in_specs=in_specs,
            out_specs=pl.BlockSpec((tm, Cp), lambda i: (i, 0))),
        compiler_params=pltpu.CompilerParams(
            dimension_semantics=("parallel",)),
    )(*args)
    return out


# --------------------------------------------------------------------------
# Conv via im2col (bf16 patches) feeding the Pallas matmul
# --------------------------------------------------------------------------

def conv2d(x_nhwc, w_mat, kh, kw, stride, padding):
    """x_nhwc: [N,H,W,Cin] f32; w_mat: [kh*kw*Cin, Cout] bf16 (pre-laid-out).
    Returns (padded [Mp, Cp] f32 output matrix, (N, Ho, Wo, Cout))."""
    N, H, W, Cin = x_nhwc.shape
    K, Cout = w_mat.shape
    assert K == kh * kw * Cin
    Ho = (H + 2 * padding - kh) // stride + 1
    Wo = (W + 2 * padding - kw) // stride + 1
    if kh == 1 and kw == 1 and padding == 0:
        a = x_nhwc[:, ::stride, ::stride, :].reshape(N * Ho * Wo, Cin)
    else:
        xp = jnp.pad(x_nhwc, ((0, 0), (padding, padding),
                              (padding, padding), (0, 0)))
        patches = [xp[:, dy:dy + Ho * stride:stride,
                       dx:dx + Wo * stride:stride, :]
                   for dy in range(kh) for dx in range(kw)]
        a = jnp.stack(patches, axis=3).reshape(N * Ho * Wo, kh * kw * Cin)
    a = a.astype(jnp.bfloat16)       # halve HBM traffic of the patch tensor
    out_pad = pallas_matmul(a, w_mat)
    return out_pad, (N, Ho, Wo, Cout)


def _unpad_nhwc(x_pad, dims):
    N, H, W, C = dims
    return x_pad[:N * H * W, :C].reshape(N, H, W, C)


# --------------------------------------------------------------------------
# Parameters (deterministic, mirroring the PyTorch _initialize_weights;
# conv weights pre-transposed to [kh*kw*Cin, Cout] and pre-cast to bf16)
# --------------------------------------------------------------------------

def init_params(seed=0, num_channels=3, num_classes=10):
    key = jax.random.PRNGKey(seed)
    keys = iter(jax.random.split(key, 64))

    def conv_w(cout, cin, kh, kw):
        # kaiming_normal_(mode='fan_out', nonlinearity='relu'): std = sqrt(2/fan_out)
        fan_out = cout * kh * kw
        std = (2.0 / fan_out) ** 0.5
        w = jax.random.normal(next(keys), (cout, cin, kh, kw), jnp.float32) * std
        # Hoisted layout transform: OIHW -> [kh*kw*Cin, Cout], bf16.
        return jnp.transpose(w, (2, 3, 1, 0)).reshape(kh * kw * cin, cout) \
                  .astype(jnp.bfloat16)

    params = {
        "conv1_w": conv_w(64, num_channels, 3, 3),
        "bn1_g": jnp.ones((64,), jnp.float32),
        "bn1_b": jnp.zeros((64,), jnp.float32),
    }
    in_c = 64
    for li, (out_c, first_stride) in enumerate(
            [(64, 1), (128, 2), (256, 2), (512, 2)], start=1):
        blocks = []
        for s in [first_stride, 1]:
            blk = {
                "stride": s,
                "w1": conv_w(out_c, in_c, 3, 3),
                "bn1_g": jnp.ones((out_c,), jnp.float32),
                "bn1_b": jnp.zeros((out_c,), jnp.float32),
                "w2": conv_w(out_c, out_c, 3, 3),
                "bn2_g": jnp.ones((out_c,), jnp.float32),
                "bn2_b": jnp.zeros((out_c,), jnp.float32),
            }
            if s != 1 or in_c != out_c:
                blk["w_sc"] = conv_w(out_c, in_c, 1, 1)
                blk["bn_sc_g"] = jnp.ones((out_c,), jnp.float32)
                blk["bn_sc_b"] = jnp.zeros((out_c,), jnp.float32)
            blocks.append(blk)
            in_c = out_c
        params[f"layer{li}"] = blocks
    # fc: Linear(512 -> num_classes); store pre-transposed [512, num_classes].
    fc_w = jax.random.normal(next(keys), (num_classes, 512), jnp.float32) * 0.01
    params["fc_w"] = jnp.transpose(fc_w, (1, 0)).astype(jnp.bfloat16)
    params["fc_b"] = jnp.zeros((num_classes,), jnp.float32)
    return params


# --------------------------------------------------------------------------
# Forward pass
# --------------------------------------------------------------------------

def basic_block(x_nhwc, p):
    s = p["stride"]
    N, H, W, Cin = x_nhwc.shape

    out1, dims1 = conv2d(x_nhwc, p["w1"], 3, 3, s, 1)
    M1 = dims1[0] * dims1[1] * dims1[2]
    out1 = bn_act(out1, M1, p["bn1_g"], p["bn1_b"], residual=None, relu=True)
    out1_nhwc = _unpad_nhwc(out1, dims1)

    out2, dims2 = conv2d(out1_nhwc, p["w2"], 3, 3, 1, 1)
    M2 = dims2[0] * dims2[1] * dims2[2]

    if "w_sc" in p:
        sc, _ = conv2d(x_nhwc, p["w_sc"], 1, 1, s, 0)
        sc = bn_act(sc, M2, p["bn_sc_g"], p["bn_sc_b"], residual=None,
                    relu=False)
    else:
        # identity shortcut: lay x out as the same padded [Mp, Cp] matrix
        Mp, Cp = out2.shape
        x2 = x_nhwc.reshape(N * H * W, Cin)
        sc = jnp.pad(x2, ((0, Mp - N * H * W), (0, Cp - Cin)))

    # out = relu(bn2(conv2(out1)) + shortcut)
    out2 = bn_act(out2, M2, p["bn2_g"], p["bn2_b"], residual=sc, relu=True)
    return _unpad_nhwc(out2, dims2)


def resnet18_forward(x_nchw, params):
    # NCHW (PyTorch) -> NHWC (internal)
    x = jnp.transpose(x_nchw.astype(jnp.float32), (0, 2, 3, 1))

    out, dims = conv2d(x, params["conv1_w"], 3, 3, 1, 1)
    M = dims[0] * dims[1] * dims[2]
    out = bn_act(out, M, params["bn1_g"], params["bn1_b"], residual=None,
                 relu=True)
    x = _unpad_nhwc(out, dims)

    for layer in ("layer1", "layer2", "layer3", "layer4"):
        for blk in params[layer]:
            x = basic_block(x, blk)

    # AdaptiveAvgPool2d((1,1)) + flatten (tiny reduction -> plain JAX glue)
    feat = jnp.mean(x, axis=(1, 2))                     # [N, 512]

    # fc on the MXU via Pallas
    logits_pad = pallas_matmul(feat, params["fc_w"])    # padded [Mp, Np]
    n = feat.shape[0]
    nc = params["fc_b"].shape[0]
    return logits_pad[:n, :nc] + params["fc_b"][None, :]


if __name__ == "__main__":
    params = init_params(seed=0)
    x = jax.random.normal(jax.random.PRNGKey(0), (2, 3, 16, 16), jnp.float32)
    out = resnet18_forward(x, params)
    out = jax.block_until_ready(out)
    assert out.shape == (2, 10), out.shape
    assert bool(jnp.all(jnp.isfinite(out)))
    print("KERNEL_OK")
</pallas_src>

<mosaic_0001>
module attributes {stable_mosaic.version = 11 : i64} {
  func.func @_matmul_kernel(%arg0: i32, %arg1: i32, %arg2: i32, %arg3: memref<256x128xbf16, #tpu.memory_space<vmem>>, %arg4: memref<128x128xbf16, #tpu.memory_space<vmem>>, %arg5: memref<256x128xf32, #tpu.memory_space<vmem>>) attributes {dimension_semantics = [#tpu.dimension_semantics<parallel>, #tpu.dimension_semantics<parallel>, #tpu.dimension_semantics<arbitrary>], iteration_bounds = array<i64: 2, 1, 1>, scalar_prefetch = 0 : i64, scratch_operands = 0 : i64, tpu.core_type = #tpu.core_type<tc>, window_params = [{transform_indices = @transform_0, window_bounds = array<i64: 256, 128>}, {transform_indices = @transform_1, window_bounds = array<i64: 128, 128>}, {transform_indices = @transform_2, window_bounds = array<i64: 256, 128>}]} {
    %c0_i32 = arith.constant 0 : i32
    %0 = arith.cmpi eq, %arg2, %c0_i32 : i32
    %1 = arith.extui %0 : i1 to i32
    %c0_i32_0 = arith.constant 0 : i32
    %2 = arith.cmpi ne, %1, %c0_i32_0 : i32
    scf.if %2 {
      %cst_8 = arith.constant 0.000000e+00 : f32
      %9 = vector.broadcast %cst_8 : f32 to vector<256x128xf32>
      %c0_9 = arith.constant 0 : index
      %c0_10 = arith.constant 0 : index
      %10 = vector.load %arg5[%c0_9, %c0_10] : memref<256x128xf32, #tpu.memory_space<vmem>>, vector<256x128xf32>
      tpu.vector_store %arg5[%c0_9, %c0_10], %9 {strides = array<i32>} : memref<256x128xf32, #tpu.memory_space<vmem>>, vector<256x128xf32>,
    } else {
    }
    %c0 = arith.constant 0 : index
    %c0_1 = arith.constant 0 : index
    %3 = vector.load %arg5[%c0, %c0_1] : memref<256x128xf32, #tpu.memory_space<vmem>>, vector<256x128xf32>
    %c0_2 = arith.constant 0 : index
    %c0_3 = arith.constant 0 : index
    %4 = vector.load %arg3[%c0_2, %c0_3] : memref<256x128xbf16, #tpu.memory_space<vmem>>, vector<256x128xbf16>
    %c0_4 = arith.constant 0 : index
    %c0_5 = arith.constant 0 : index
    %5 = vector.load %arg4[%c0_4, %c0_5] : memref<128x128xbf16, #tpu.memory_space<vmem>>, vector<128x128xbf16>
    %cst = arith.constant dense<0.000000e+00> : vector<256x128xf32>
    %6 = tpu.matmul %4, %5, %cst {dimension_numbers = #tpu.dot_dimension_numbers<[1], [0], [0], [1], [0, 0, 1, 1], [], []>} : vector<256x128xbf16>, vector<128x128xbf16>, vector<256x128xf32> -> vector<256x128xf32>
    %7 = arith.addf %3, %6 : vector<256x128xf32>
    %c0_6 = arith.constant 0 : index
    %c0_7 = arith.constant 0 : index
    %8 = vector.load %arg5[%c0_6, %c0_7] : memref<256x128xf32, #tpu.memory_space<vmem>>, vector<256x128xf32>
    tpu.vector_store %arg5[%c0_6, %c0_7], %7 {strides = array<i32>} : memref<256x128xf32, #tpu.memory_space<vmem>>, vector<256x128xf32>,
    return
  }
  func.func @transform_0(%arg0: i32, %arg1: i32, %arg2: i32) -> (i32, i32) {
    %c0_i32 = arith.constant 0 : i32
    return %arg0, %arg2 : i32, i32
  }
  func.func @transform_1(%arg0: i32, %arg1: i32, %arg2: i32) -> (i32, i32) {
    %c0_i32 = arith.constant 0 : i32
    return %arg2, %arg1 : i32, i32
  }
  func.func @transform_2(%arg0: i32, %arg1: i32, %arg2: i32) -> (i32, i32) {
    %c0_i32 = arith.constant 0 : i32
    return %arg0, %arg1 : i32, i32
  }
}

</mosaic_0001>

<bundles_post_ra>
// kernel: tpu_custom_call.1
= control target key start
LH: loop header
LB: loop body
LE: loop exit
PB: predicated region body
PF: predicated region fallthrough
CT: control target
= control target key end

     0   :  { %7 = vsyncpa [#allocation3], 0  ;;  %s1498_s0 = inlined_call_operand.hbm [shape: bf16[512,128], index: 0, kind: input, shape index: {}]   ;;  %s1499_s1 = inlined_call_operand.hbm [shape: bf16[128,128], index: 1, kind: input, shape index: {}]   ;;  %s1500_s2 = inlined_call_operand.hbm [shape: f32[512,128], index: 2, kind: output, shape index: {}]  }
   0x1   :  { %9 = vsyncpa [#allocation3 + $0x1], 0 }
   0x2   :  { %10 = vsyncpa [#allocation6], 0 }
   0x3   :  { %11 = vsyncpa [#allocation4], 0 }
   0x4   :  { %13 = vsyncpa [#allocation4 + $0x1], 0  ;;  %s1219_s9 = smov 0   ;;  %s1221_s10 = smov 0  }
   0x5   :  { %s1223_s11 = smov 0   ;;  %s1225_s12 = smov 0  }
   0x6   :  { %s1227_s13 = smov 0   ;;  %s1229_s14 = smov 0  }
   0x7 LB: > { %s818_s15 = sadd.s32 4294967295, %s1195_s14   ;;  %s819_s16 = sadd.s32 4294967294, %s1195_s14   ;;  %s1195_s14 = sphi %s1229_s14, %s19_s14   ;;  %s1191_s13 = sphi %s1227_s13, %s1524_s13   ;;  %s1187_s12 = sphi %s1225_s12, %s1523_s12   ;;  %s1183_s11 = sphi %s1223_s11, %s1522_s11   ;;  %s1179_s10 = sphi %s1221_s10, %s1521_s10   ;;  %s1175_s9 = sphi %s1219_s9, %s1520_s9  }
   0x8   : > { %p60_p0 = scmp.ne.s32.totalorder %s1179_s10, %s1175_s9  ;;  %p1253_p1 = scmp.eq.s32.totalorder %s818_s15, 0 }
   0x9   : > { %p1257_p2 = scmp.eq.s32.totalorder %s818_s15, 1  ;;  %p120_p3 = scmp.eq.s32.totalorder %s819_s16, 1 }
   0xa   : > { %s1505_s17 = scalar_select %p1253_p1, 1, 0 }
   0xb   : > { %s1506_s18 = scalar_select %p1257_p2, 1, 0 }
   0xc   : > { %p1263_p4 = por %p1253_p1, %p60_p0  ;;  %p820_p5 = scmp.ge.s32.totalorder %s1195_s14, 1 }
   0xd   : > { %p1268_p6 = por %p120_p3, %p60_p0  ;;  %p127_p7 = scmp.lt.s32.totalorder %s1195_s14, 3 }
   0xe   : > { %s1507_s19 = scalar_select %p1263_p4, 1, 0 }
   0xf   : > { %s1508_s20 = scalar_select %p1268_p6, 1, 0 }
  0x10   : > { %p1273_p8 = pnand %p820_p5, %p127_p7  ;;  %s1197_s22 = smov [#allocation5]  }
  0x11   : > { %s143_s23 = sshll.u32 %s1197_s22, 4  ;;  %s38_s25 = sadd.s32 1, %s1191_s13  ;;  %s144_s23 = int_to_ptr.vmem [resolvable:$true] %s143_s23 }
  0x12   : > { %s1509_s21 = scalar_select %p1273_p8, 1, 0 }
  0x13   : > { %p957_p9 = pneg %p1273_p8  ;;  %s1051_s28 = scalar_lea.hbm %s1499_s1, 1024 }
  0x14   : > { %p1052_p12 = scmp.ne.s32.totalorder %s1499_s1, %s1051_s28  ;;  %p1058_p5 = scmp.lt.u32.totalorder %s1051_s28, %s1499_s1 }
  0x15   : > { %p1282_p11 = pnand %p957_p9, %p1253_p1 }
  0x17   : > { %p1053_p13 = pneg %p1282_p11 }
  0x19   : > { %p1054_p0 = pnand %p1053_p13, %p1052_p12 }
  0x1b   : > { %p1055_p3 = pneg %p1054_p0 }
  0x1d   : > { %p1060_p7 = pnand %p1058_p5, %p1055_p3 }
  0x1f   : > { %1063 = shalt.err (!%p1060_p7)
}
  0x20   : > { %s1064_s5 = scalar_lea.vmem %s144_s23, 1024  ;;  %p1072_p1 = scmp.lt.s32.totalorder %s144_s23, %s144_s23 }
  0x21   : > { %p1065_p9 = scmp.ne.s32.totalorder %s144_s23, %s1064_s5  ;;  %p1073_p4 = scmp.lt.s32.totalorder %s1064_s5, %s1064_s5 }
  0x23   : > { %p1067_p10 = pnand %p1065_p9, %p1053_p13  ;;  %p1074_p8 = por %p1073_p4, %p1072_p1 }
  0x25   : > { %p1068_p6 = pneg %p1067_p10 }
  0x27   : > { %p1075_p2 = pnand %p1074_p8, %p1068_p6 }
  0x29   : > { %1078 = shalt.err (!%p1075_p2)
}
  0x2a   : > { %s1198_s6 = smov 64   ;;  %s1199_s7 = smov 4  }
  0x2b   : > { %960 = dma.hbm_to_vmem [thread:$0]  (!%p1282_p11), %s1499_s1, 1024, %s144_s23, [#allocation6], %s1198_s6, %s1198_s6, %s1199_s7  }
  0x2c   : > { %p40_p1 = scmp.ge.s32.totalorder %s38_s25, 2  ;;  %s47_s16 = sadd.s32 1, %s1183_s11 }
  0x2d   : > { %p54_p2 = scmp.ne.s32.totalorder %s1183_s11, %s1179_s10  ;;  %p55_p4 = scmp.eq.s32.totalorder %s1195_s14, 0 }
  0x2e   : > { %s1526_s25 = smov (%p40_p1, %s38_s25), 0  ;;  %p1512_p8 = scmp.ne.s32.totalorder %s1506_s18, 0 }
  0x2f   : > { %p1312_p6 = por %p55_p4, %p54_p2  ;;  %s42_s26 = ssub.s32 %s1191_s13, %s1526_s25 }
  0x30   : > { %p1318_p10 = por %p1512_p8, %p54_p2  ;;  %p970_p12 = scmp.lt.s32.totalorder %s1195_s14, 2 }
  0x31   : > { %p45_p11 = scmp.eq.s32.totalorder %s42_s26, 0  ;;  %s157_s23 = sand.u32 1, %s1183_s11  }
  0x32   : > { %s823_s27 = sshll.u32 %s157_s23, 7  ;;  %s859_s29 = sshll.u32 %s1191_s13, 11 }
  0x33   : > { %s1327_s28 = scalar_select %p45_p11, %s1183_s11, %s47_s16  }
  0x34   : > { %s1333_s4 = scalar_lea.hbm %s1498_s0, %s859_s29  ;;  %s161_s18 = scalar_lea.vmem [#allocation2], %s823_s27 }
  0x35   : > { %s169_s5 = sshll.u32 %s161_s18, 4  ;;  %p1339_p13 = pnand %p970_p12, %p1312_p6  ;;  %s1335_s5 = int_to_ptr.vmem [resolvable:$true] %s169_s5 }
  0x36   : > { %s1343_s15 = scalar_lea.sflag [#allocation3], %s157_s23  ;;  %s1079_s16 = scalar_lea.hbm %s1333_s4, 2048 }
  0x37   : > { %p1080_p0 = scmp.ne.s32.totalorder %s1333_s4, %s1079_s16  ;;  %p1081_p3 = pneg %p1339_p13 }
  0x38   : > { %s1084_s22 = scalar_lea.hbm %s1498_s0, 4096  ;;  %p1085_p9 = scmp.lt.u32.totalorder %s1333_s4, %s1498_s0 }
  0x39   : > { %p1082_p5 = pnand %p1081_p3, %p1080_p0  ;;  %p1086_p1 = scmp.lt.u32.totalorder %s1084_s22, %s1079_s16 }
  0x3a   : > { %p1088_p4 = scmp.lt.u32.totalorder %s1079_s16, %s1333_s4 }
  0x3b   : > { %p1083_p7 = pneg %p1082_p5  ;;  %p1087_p2 = por %p1086_p1, %p1085_p9 }
  0x3d   : > { %p1089_p6 = por %p1088_p4, %p1087_p2 }
  0x3f   : > { %p1090_p8 = pnand %p1089_p6, %p1083_p7 }
  0x41   : > { %1093 = shalt.err (!%p1090_p8)
}
  0x42   : > { %s1094_s23 = scalar_lea.vmem %s1335_s5, 2048  ;;  %s1200_s3 = smov [#allocation2]  }
  0x43   : > { %p1095_p12 = scmp.ne.s32.totalorder %s1335_s5, %s1094_s23  ;;  %s1099_s18 = sshll.u32 %s1200_s3, 4  ;;  %s1100_s18 = int_to_ptr.vmem [resolvable:$false] %s1099_s18 }
  0x44   : > { %s1101_s26 = scalar_lea.vmem %s1100_s18, 4096  ;;  %p1102_p5 = scmp.lt.s32.totalorder %s1335_s5, %s1100_s18 }
  0x45   : > { %p1097_p11 = pnand %p1095_p12, %p1081_p3  ;;  %p1103_p9 = scmp.lt.s32.totalorder %s1101_s26, %s1094_s23 }
  0x47   : > { %p1098_p0 = pneg %p1097_p11  ;;  %p1104_p1 = por %p1103_p9, %p1102_p5 }
  0x49   : > { %p1105_p2 = pnand %p1104_p1, %p1098_p0 }
  0x4b   : > { %1108 = shalt.err (!%p1105_p2)
}
  0x4c   : > { %964 = dma.hbm_to_vmem [thread:$0]  (!%p1339_p13), %s1333_s4, 2048, %s1335_s5, %s1343_s15, %s1198_s6, %s1198_s6, %s1199_s7  }
  0x4d   : > { %p1515_p3 = scmp.ne.s32.totalorder %s1509_s21, 0 }
  0x4e   : > { %s1377_s16 = sand.u32 (!%p1515_p3), 1, %s1179_s10   ;;  %p1516_p7 = scmp.ne.s32.totalorder (!%p1515_p3), %s1507_s19, 0 }
  0x4f   : > { %181 = sbr.rel (%p1515_p3) target bundleno = 377 (0x179), region = 28  ;;  %s827_s27 = sshll.u32 (!%p1515_p3), %s1377_s16, 7 }
  0x50   : > { %s184_s22 = scalar_lea.sflag (!%p1515_p3), [#allocation3], %s1377_s16  ;;  %s1381_s29 = scalar_lea.vmem (!%p1515_p3), [#allocation2], %s827_s27 }
  0x56   : > { %1162 = dma.done.wait (%p1516_p7), %s184_s22, 2048  }
  0x57   : > { %1164 = vsyncadd (%p1516_p7), %s184_s22, 4294965248  ;;  %p1517_p13 = scmp.ne.s32.totalorder %s1505_s17, 0 }
  0x59   : > { %1166 = dma.done.wait (%p1517_p13), [#allocation6], 1024  }
  0x5a   : > { %1168 = vsyncadd (%p1517_p13), [#allocation6], 4294966272  ;;  %v1027_v0 = vld [vmem:[#allocation5] sm:$0xff]   ;;  %v1028_v1 = vld [vmem:[#allocation5 + $0x8] sm:$0xff]   ;;  %s829_s17 = sshll.u32 %s1377_s16, 8  ;;  %s860_s21 = sshll.u32 %s1187_s12, 12 }
  0x5b   : > { %885 = vmatprep.subr.bf16.mxu0 %v1027_v0  ;;  %933 = vmatprep.subr.bf16.mxu1 %v1027_v0  ;;  %v1029_v2 = vld [vmem:[#allocation5 + $0x10] sm:$0xff]   ;;  %v1030_v3 = vld [vmem:[#allocation5 + $0x18] sm:$0xff]   ;;  %v1035_v4 = vld [vmem:[%s1381_s29] sm:$0xff]   ;;  %s1408_s19 = scalar_lea.vmem [#allocation7], %s829_s17  ;;  %s1441_s5 = scalar_lea.hbm %s1500_s2, %s860_s21 }
  0x5c   : > { %886 = vmatpush3.bf16.msra.mxu0 %v1027_v0  ;;  %941 = vmatpush3.bf16.msra.mxu1 %v1027_v0  ;;  %v1036_v5 = vld [vmem:[%s1381_s29 + $0x40] sm:$0xff]   ;;  %v1032_v7 = vld [vmem:[#allocation5 + $0x28] sm:$0xff]   ;;  %v1033_v8 = vld [vmem:[#allocation5 + $0x30] sm:$0xff]   ;;  %s716_s6 = sshll.u32 %s1408_s19, 4  ;;  %s702_s12 = scalar_lea.sflag [#allocation4], %s1377_s16  ;;  %s1443_s6 = int_to_ptr.vmem [resolvable:$true] %s716_s6 }
  0x5d   : > { %887 = vmatprep.subr.bf16.mxu0 %v1028_v1  ;;  %934 = vmatprep.subr.bf16.mxu1 %v1028_v1  ;;  %v1031_v6 = vld [vmem:[#allocation5 + $0x20] sm:$0xff]   ;;  %v1034_v9 = vld [vmem:[#allocation5 + $0x38] sm:$0xff]   ;;  %v1037_v10 = vld [vmem:[%s1381_s29 + $0x8] sm:$0xff]   ;;  %s1109_s8 = scalar_lea.vmem %s1443_s6, 4096  ;;  %s1201_s15 = smov [#allocation7]  }
  0x5e   : > { %901 = vmatprep.mubr.bf16.mxu0 %v1035_v4  ;;  %917 = vmatprep.mubr.bf16.mxu1 %v1036_v5  ;;  %v1038_v11 = vld [vmem:[%s1381_s29 + $0x48] sm:$0xff]   ;;  %v1039_v12 = vld [vmem:[%s1381_s29 + $0x10] sm:$0xff]   ;;  %v1041_v14 = vld [vmem:[%s1381_s29 + $0x18] sm:$0xff]   ;;  %p1110_p4 = scmp.ne.s32.totalorder %s1443_s6, %s1109_s8  ;;  %s1113_s30 = sshll.u32 %s1201_s15, 4  ;;  %s1114_s30 = int_to_ptr.vmem [resolvable:$false] %s1113_s30 }
  0x5f   : > { %v1040_v13 = vld [vmem:[%s1381_s29 + $0x50] sm:$0xff]   ;;  %v1042_v15 = vld [vmem:[%s1381_s29 + $0x58] sm:$0xff]   ;;  %v1043_v16 = vld [vmem:[%s1381_s29 + $0x20] sm:$0xff]   ;;  %s1115_s23 = scalar_lea.vmem %s1114_s30, 8192  ;;  %p1116_p12 = scmp.lt.s32.totalorder %s1443_s6, %s1114_s30 }
  0x60   : > { %888 = vmatpush3.bf16.msra.mxu0 %v1028_v1  ;;  %942 = vmatpush3.bf16.msra.mxu1 %v1028_v1  ;;  %v1044_v17 = vld [vmem:[%s1381_s29 + $0x60] sm:$0xff]   ;;  %v1045_v18 = vld [vmem:[%s1381_s29 + $0x28] sm:$0xff]   ;;  %v1047_v20 = vld [vmem:[%s1381_s29 + $0x30] sm:$0xff]   ;;  %p1111_p6 = pnand %p1110_p4, %p1318_p10  ;;  %p1117_p11 = scmp.lt.s32.totalorder %s1115_s23, %s1109_s8 }
  0x61   : > { %889 = vmatprep.subr.bf16.mxu0 %v1029_v2  ;;  %935 = vmatprep.subr.bf16.mxu1 %v1029_v2  ;;  %v1046_v19 = vld [vmem:[%s1381_s29 + $0x68] sm:$0xff]   ;;  %v1048_v21 = vld [vmem:[%s1381_s29 + $0x70] sm:$0xff]   ;;  %v1049_v22 = vld [vmem:[%s1381_s29 + $0x38] sm:$0xff]  }
  0x62   : > { %v1050_v23 = vld [vmem:[%s1381_s29 + $0x78] sm:$0xff]   ;;  %p1112_p8 = pneg %p1111_p6  ;;  %p1118_p0 = por %p1117_p11, %p1116_p12 }
  0x64   : > { %890 = vmatpush3.bf16.msra.mxu0 %v1029_v2  ;;  %943 = vmatpush3.bf16.msra.mxu1 %v1029_v2  ;;  %p1119_p5 = pnand %p1118_p0, %p1112_p8 }
  0x65   : > { %891 = vmatprep.subr.bf16.mxu0 %v1030_v3  ;;  %936 = vmatprep.subr.bf16.mxu1 %v1030_v3 }
  0x68   : > { %892 = vmatpush3.bf16.msra.mxu0 %v1030_v3  ;;  %944 = vmatpush3.bf16.msra.mxu1 %v1030_v3 }
  0x69   : > { %893 = vmatprep.subr.bf16.mxu0 %v1031_v6  ;;  %937 = vmatprep.subr.bf16.mxu1 %v1031_v6 }
  0x6c   : > { %894 = vmatpush3.bf16.msra.mxu0 %v1031_v6  ;;  %945 = vmatpush3.bf16.msra.mxu1 %v1031_v6 }
  0x6d   : > { %895 = vmatprep.subr.bf16.mxu0 %v1032_v7  ;;  %938 = vmatprep.subr.bf16.mxu1 %v1032_v7 }
  0x70   : > { %896 = vmatpush3.bf16.msra.mxu0 %v1032_v7  ;;  %946 = vmatpush3.bf16.msra.mxu1 %v1032_v7 }
  0x71   : > { %897 = vmatprep.subr.bf16.mxu0 %v1033_v8  ;;  %939 = vmatprep.subr.bf16.mxu1 %v1033_v8 }
  0x74   : > { %898 = vmatpush3.bf16.msra.mxu0 %v1033_v8  ;;  %947 = vmatpush3.bf16.msra.mxu1 %v1033_v8 }
  0x75   : > { %899 = vmatprep.subr.bf16.mxu0 %v1034_v9  ;;  %940 = vmatprep.subr.bf16.mxu1 %v1034_v9 }
  0x78   : > { %900 = vmatpush3.bf16.msra.mxu0 %v1034_v9  ;;  %948 = vmatpush3.bf16.msra.mxu1 %v1034_v9 }
  0x7b   : > { %902 = vmatmul.mubr.bf16.vlgmr.msra.gmra.mrb[0].mxu0 %v1037_v10  ;;  %918 = vmatmul.mubr.bf16.vlgmr.msra.gmra.mrb[0].mxu1 %v1038_v11 }
  0x7c   : > { %905 = vmatprep.mubr.bf16.mxu0 %v1039_v12  ;;  %921 = vmatprep.mubr.bf16.mxu1 %v1040_v13 }
  0x83   : > { %906 = vmatmul.mubr.bf16.gmra.mrb[4].mxu0 %v1041_v14  ;;  %922 = vmatmul.mubr.bf16.gmra.mrb[4].mxu1 %v1042_v15 }
  0x84   : > { %909 = vmatprep.mubr.bf16.mxu0 %v1043_v16  ;;  %925 = vmatprep.mubr.bf16.mxu1 %v1044_v17 }
  0x8b   : > { %910 = vmatmul.mubr.bf16.gmra.mrb[8].mxu0 %v1045_v18  ;;  %926 = vmatmul.mubr.bf16.gmra.mrb[8].mxu1 %v1046_v19 }
  0x8c   : > { %913 = vmatprep.mubr.bf16.mxu0 %v1047_v20  ;;  %929 = vmatprep.mubr.bf16.mxu1 %v1048_v21 }
  0x93   : > { %914 = vmatmul.mubr.bf16.gmra.mrb[12].mxu0 %v1049_v22  ;;  %930 = vmatmul.mubr.bf16.gmra.mrb[12].mxu1 %v1050_v23 }
 0x14e   : > { %v903_v24 = vpop.f32.mrb[0].mxu0  ;;  %v919_v25 = vpop.f32.mrb[0].mxu1 }
 0x14f   : > { %v510_v26 = vpop.f32.mrb[1].mxu0  ;;  %v574_v27 = vpop.f32.mrb[1].mxu1  ;;  %671 = vst [vmem:[%s1408_s19 + $0x10] sm:$0xff] %v903_v24  ;;  %687 = vst [vmem:[%s1408_s19 + $0x90] sm:$0xff] %v919_v25 }
 0x150   : > { %v904_v28 = vpop.f32.mrb[2].mxu0  ;;  %v920_v29 = vpop.f32.mrb[2].mxu1  ;;  %669 = vst [vmem:[%s1408_s19] sm:$0xff] %v510_v26  ;;  %685 = vst [vmem:[%s1408_s19 + $0x80] sm:$0xff] %v574_v27 }
 0x151   : > { %v513_v30 = vpop.f32.mrb[3].mxu0  ;;  %v577_v31 = vpop.f32.mrb[3].mxu1  ;;  %672 = vst [vmem:[%s1408_s19 + $0x18] sm:$0xff] %v904_v28  ;;  %688 = vst [vmem:[%s1408_s19 + $0x98] sm:$0xff] %v920_v29 }
 0x152   : > { %670 = vst [vmem:[%s1408_s19 + $0x8] sm:$0xff] %v513_v30  ;;  %686 = vst [vmem:[%s1408_s19 + $0x88] sm:$0xff] %v577_v31 }
 0x156   : > { %v907_v32 = vpop.f32.mrb[4].mxu0  ;;  %v923_v33 = vpop.f32.mrb[4].mxu1 }
 0x157   : > { %v526_v34 = vpop.f32.mrb[5].mxu0  ;;  %v590_v35 = vpop.f32.mrb[5].mxu1  ;;  %675 = vst [vmem:[%s1408_s19 + $0x30] sm:$0xff] %v907_v32  ;;  %691 = vst [vmem:[%s1408_s19 + $0xb0] sm:$0xff] %v923_v33 }
 0x158   : > { %v908_v36 = vpop.f32.mrb[6].mxu0  ;;  %v924_v37 = vpop.f32.mrb[6].mxu1  ;;  %673 = vst [vmem:[%s1408_s19 + $0x20] sm:$0xff] %v526_v34  ;;  %689 = vst [vmem:[%s1408_s19 + $0xa0] sm:$0xff] %v590_v35 }
 0x159   : > { %v529_v38 = vpop.f32.mrb[7].mxu0  ;;  %v593_v39 = vpop.f32.mrb[7].mxu1  ;;  %676 = vst [vmem:[%s1408_s19 + $0x38] sm:$0xff] %v908_v36  ;;  %692 = vst [vmem:[%s1408_s19 + $0xb8] sm:$0xff] %v924_v37 }
 0x15a   : > { %674 = vst [vmem:[%s1408_s19 + $0x28] sm:$0xff] %v529_v38  ;;  %690 = vst [vmem:[%s1408_s19 + $0xa8] sm:$0xff] %v593_v39 }
 0x15e   : > { %v911_v40 = vpop.f32.mrb[8].mxu0  ;;  %v927_v41 = vpop.f32.mrb[8].mxu1 }
 0x15f   : > { %v542_v42 = vpop.f32.mrb[9].mxu0  ;;  %v606_v43 = vpop.f32.mrb[9].mxu1  ;;  %679 = vst [vmem:[%s1408_s19 + $0x50] sm:$0xff] %v911_v40  ;;  %695 = vst [vmem:[%s1408_s19 + $0xd0] sm:$0xff] %v927_v41 }
 0x160   : > { %v912_v44 = vpop.f32.mrb[10].mxu0  ;;  %v928_v45 = vpop.f32.mrb[10].mxu1  ;;  %677 = vst [vmem:[%s1408_s19 + $0x40] sm:$0xff] %v542_v42  ;;  %693 = vst [vmem:[%s1408_s19 + $0xc0] sm:$0xff] %v606_v43 }
 0x161   : > { %v545_v46 = vpop.f32.mrb[11].mxu0  ;;  %v609_v47 = vpop.f32.mrb[11].mxu1  ;;  %680 = vst [vmem:[%s1408_s19 + $0x58] sm:$0xff] %v912_v44  ;;  %696 = vst [vmem:[%s1408_s19 + $0xd8] sm:$0xff] %v928_v45 }
 0x162   : > { %678 = vst [vmem:[%s1408_s19 + $0x48] sm:$0xff] %v545_v46  ;;  %694 = vst [vmem:[%s1408_s19 + $0xc8] sm:$0xff] %v609_v47 }
 0x166   : > { %v915_v48 = vpop.f32.mrb[12].mxu0  ;;  %v931_v49 = vpop.f32.mrb[12].mxu1 }
 0x167   : > { %v558_v50 = vpop.f32.mrb[13].mxu0  ;;  %v622_v51 = vpop.f32.mrb[13].mxu1  ;;  %683 = vst [vmem:[%s1408_s19 + $0x70] sm:$0xff] %v915_v48  ;;  %699 = vst [vmem:[%s1408_s19 + $0xf0] sm:$0xff] %v931_v49 }
 0x168   : > { %v916_v52 = vpop.f32.mrb[14].mxu0  ;;  %v932_v53 = vpop.f32.mrb[14].mxu1  ;;  %681 = vst [vmem:[%s1408_s19 + $0x60] sm:$0xff] %v558_v50  ;;  %697 = vst [vmem:[%s1408_s19 + $0xe0] sm:$0xff] %v622_v51 }
 0x169   : > { %v561_v54 = vpop.f32.mrb[15].mxu0  ;;  %v625_v55 = vpop.f32.mrb[15].mxu1  ;;  %684 = vst [vmem:[%s1408_s19 + $0x78] sm:$0xff] %v916_v52  ;;  %700 = vst [vmem:[%s1408_s19 + $0xf8] sm:$0xff] %v932_v53 }
 0x16a   : > { %682 = vst [vmem:[%s1408_s19 + $0x68] sm:$0xff] %v561_v54  ;;  %698 = vst [vmem:[%s1408_s19 + $0xe8] sm:$0xff] %v625_v55 }
 0x16b   : > { %1122 = shalt.err (!%p1119_p5)
}
 0x16c   : > { %s1123_s3 = scalar_lea.hbm %s1441_s5, 4096  ;;  %s1127_s27 = scalar_lea.hbm %s1500_s2, 8192 }
 0x16d   : > { %p1124_p9 = scmp.ne.s32.totalorder %s1441_s5, %s1123_s3  ;;  %p1128_p3 = scmp.lt.u32.totalorder %s1441_s5, %s1500_s2 }
 0x16e   : > { %p1129_p7 = scmp.lt.u32.totalorder %s1127_s27, %s1123_s3  ;;  %p1131_p4 = scmp.lt.u32.totalorder %s1123_s3, %s1441_s5 }
 0x16f   : > { %p1125_p1 = pnand %p1124_p9, %p1318_p10 }
 0x170   : > { %p1130_p13 = por %p1129_p7, %p1128_p3 }
 0x171   : > { %p1126_p2 = pneg %p1125_p1 }
 0x172   : > { %p1132_p6 = por %p1131_p4, %p1130_p13 }
 0x174   : > { %p1133_p8 = pnand %p1132_p6, %p1126_p2 }
 0x176   : > { %1136 = shalt.err (!%p1133_p8)
}
 0x177   : > { %s1202_s17 = smov 128   ;;  %s1203_s19 = smov 8  }
 0x178   : > { %955 = dma.vmem_to_hbm [thread:$0]  (%p1318_p10), %s1443_s6, 4096, %s1441_s5, %s702_s12, %s1202_s17, %s1202_s17, %s1203_s19  }
 0x179 PF: > { %s731_s21 = sand.u32 1, %s1175_s9   ;;  %p1518_p12 = scmp.ne.s32.totalorder %s1508_s20, 0 }
 0x17a   : > { %p1519_p11 = scmp.ge.s32.totalorder %s1195_s14, 2  ;;  %s732_s7 = scalar_lea.sflag [#allocation4], %s731_s21 }
 0x17c   : > { %p966_p0 = pnand %p1519_p11, %p1518_p12 }
 0x17e   : > { %1170 = dma.done.wait (!%p966_p0), %s732_s7, 4096  }
 0x17f   : > { %1172 = vsyncadd (!%p966_p0), %s732_s7, 4294963200  ;;  %s19_s14 = sadd.s32 1, %s1195_s14   ;;  %s1520_s9 = smov %s1179_s10 }
 0x180   : > { %p16_p5 = scmp.ge.s32.totalorder %s19_s14, 4   ;;  %s1521_s10 = smov %s1183_s11 }
 0x181   : > { %s1522_s11 = smov %s1327_s28  ;;  %s1523_s12 = smov %s1191_s13 }
 0x182   : > { %s1524_s13 = smov %s1526_s25  ;;  %18 = sbr.rel (!%p16_p5) target bundleno = 7 (0x7), region = 82 }
 0x189   :  { %737 = vsyncpa [#allocation3], 1 }
 0x18a   :  { %739 = vsyncpa [#allocation3 + $0x1], 1 }
 0x18b   :  { %740 = vsyncpa [#allocation6], 1 }
 0x18c   :  { %741 = vsyncpa [#allocation4], 1 }
 0x18d   :  { %743 = vsyncpa [#allocation4 + $0x1], 1 }

</bundles_post_ra>
